<compile_context>
chip_gen: v7x
topology: tpu7x:2x2x1
jax: 0.10.0
libtpu: 0.0.40
codegen_flags: <defaults>
</compile_context>

<pallas_src>
import jax
import jax.numpy as jnp
from jax.experimental import pallas as pl
from jax.experimental.pallas import tpu as pltpu

_NC = 2        # TensorCore split of the row axis (v7x has 2 TCs per chip)
_SUB = 8       # sublane granule
_LANE = 128    # lane granule


def _focal_loss_kernel(pred_ref, gt_ref, w_ref, tot_ref, cnt_ref,
                       acc_tot, acc_cnt):
    # pred_ref, gt_ref : VMEM (tr, tl) lane-dense tiles
    # w_ref            : VMEM (tr, 1)  per-(batch, class) weight
    # tot_ref, cnt_ref : VMEM (1, 8, 128) per-core outputs (written last step)
    # acc_tot, acc_cnt : VMEM (tr, 1)  per-core running accumulators
    i = pl.program_id(1)
    j = pl.program_id(2)

    @pl.when(jnp.logical_and(i == 0, j == 0))
    def _init():
        acc_tot[...] = jnp.zeros(acc_tot.shape, jnp.float32)
        acc_cnt[...] = jnp.zeros(acc_cnt.shape, jnp.float32)

    pred = pred_ref[...].astype(jnp.float32)
    gt = gt_ref[...].astype(jnp.float32)

    one_m_p = 1.0 - pred
    one_m_gt = 1.0 - gt
    is_pos = gt == 1.0
    is_neg = jnp.logical_and(gt < 1.0, gt > -0.5)

    sq = one_m_gt * one_m_gt                       # (1 - gt)^2
    pos_val = jnp.log(pred) * (one_m_p * one_m_p)
    neg_val = jnp.log(one_m_p) * (pred * pred) * (sq * sq)
    # Nested selects: masked-out -inf values are discarded, never 0*inf.
    loss = jnp.where(is_pos, pos_val, jnp.where(is_neg, neg_val, 0.0))

    # Lane reduction (XLU slot, hidden under the VPU/HBM critical path).
    row_loss = jnp.sum(loss, axis=1, keepdims=True)                    # (tr,1)
    row_cnt = jnp.sum(jnp.where(is_pos, 1.0, 0.0), axis=1, keepdims=True)

    # Per-row class weight applied AFTER the lane reduction: tr muls per tile.
    acc_tot[...] += row_loss * w_ref[...].astype(jnp.float32)
    acc_cnt[...] += row_cnt

    @pl.when(jnp.logical_and(i == pl.num_programs(1) - 1,
                             j == pl.num_programs(2) - 1))
    def _finalize():
        t = jnp.sum(acc_tot[...])
        c = jnp.sum(acc_cnt[...])
        # One-vreg lane-dense stores (no per-step masked sub-lane stores).
        tot_ref[...] = jnp.broadcast_to(t, tot_ref.shape)
        cnt_ref[...] = jnp.broadcast_to(c, cnt_ref.shape)


def focal_loss(pred, gt, cls_weights=None, *, max_tile_elems=512 * 1024):
    """Mirrors FocalLoss.forward(pred, gt, cls_weights) -> scalar loss."""
    assert pred.shape == gt.shape and pred.ndim == 4
    B, C, H, W = pred.shape
    R, L = B * C, H * W

    # Layout no-op: NCHW -> (B*C, H*W); no HBM transpose.
    pred2 = pred.reshape(R, L)
    gt2 = gt.reshape(R, L)

    if cls_weights is None:
        w = jnp.ones((R, 1), jnp.float32)
    else:
        cw = jnp.asarray(cls_weights, jnp.float32)
        if cw.ndim == 1:
            cw = jnp.broadcast_to(cw[None, :], (B, C))
        w = cw.reshape(R, 1)

    # ---- tile selection ---------------------------------------------------
    # Lane tile tl: multiple of 128, capped so VMEM does not scale with H*W.
    L128 = pl.cdiv(L, _LANE) * _LANE
    max_tl = max(_LANE, (max_tile_elems // _SUB) // _LANE * _LANE)
    tl = min(L128, max_tl)
    Lp = pl.cdiv(L128, tl) * tl
    nj = Lp // tl
    # Row tile tr: multiple of 8, sized so tr*tl ~= max_tile_elems.
    tr = max(_SUB, (max_tile_elems // tl) // _SUB * _SUB)
    tr = min(tr, pl.cdiv(R, _SUB) * _SUB)
    Rp = pl.cdiv(R, _NC * tr) * (_NC * tr)     # rows split across _NC cores
    ni = Rp // (_NC * tr)

    # Neutral padding: gt = -1 (neither pos nor neg -> selects 0), pred = 0.5
    # (finite logs).  Padded rows/lanes contribute exactly 0.
    if Lp != L or Rp != R:
        pred2 = jnp.pad(pred2, ((0, Rp - R), (0, Lp - L)), constant_values=0.5)
        gt2 = jnp.pad(gt2, ((0, Rp - R), (0, Lp - L)), constant_values=-1.0)
    if Rp != R:
        w = jnp.pad(w, ((0, Rp - R), (0, 0)))

    n_elems = Rp * Lp
    tot, cnt = pl.pallas_call(
        _focal_loss_kernel,
        out_shape=(
            jax.ShapeDtypeStruct((_NC, _SUB, _LANE), jnp.float32),
            jax.ShapeDtypeStruct((_NC, _SUB, _LANE), jnp.float32),
        ),
        grid_spec=pltpu.PrefetchScalarGridSpec(
            num_scalar_prefetch=0,
            grid=(_NC, ni, nj),
            in_specs=[
                pl.BlockSpec((tr, tl), lambda p, i, j: (p * ni + i, j)),
                pl.BlockSpec((tr, tl), lambda p, i, j: (p * ni + i, j)),
                pl.BlockSpec((tr, 1), lambda p, i, j: (p * ni + i, 0)),
            ],
            out_specs=(
                pl.BlockSpec((1, _SUB, _LANE), lambda p, i, j: (p, 0, 0)),
                pl.BlockSpec((1, _SUB, _LANE), lambda p, i, j: (p, 0, 0)),
            ),
            scratch_shapes=[
                pltpu.VMEM((tr, 1), jnp.float32),   # running total
                pltpu.VMEM((tr, 1), jnp.float32),   # running num_pos
            ],
        ),
        compiler_params=pltpu.CompilerParams(
            # Core split is parallel; both data axes reduce into resident
            # per-core accumulators.
            dimension_semantics=("parallel", "arbitrary", "arbitrary"),
            vmem_limit_bytes=56 * 1024 * 1024,
        ),
        cost_estimate=pl.CostEstimate(
            flops=18 * n_elems,
            transcendentals=2 * n_elems,
            bytes_accessed=2 * n_elems * pred2.dtype.itemsize
            + w.size * 4 + 2 * _NC * _SUB * _LANE * 4),
    )(pred2, gt2, w)

    total = tot[:, 0, 0].sum()
    npos = cnt[:, 0, 0].sum()
    # Exact: pos_loss == 0 whenever npos == 0, so a single divide covers both
    # branches of the PyTorch reference (no jnp.where needed).
    return -total / jnp.maximum(npos, 1.0)


def _neg_loss_ref(pred, gt, cls_weights=None):
    pos_inds = (gt == 1.0).astype(jnp.float32)
    neg_inds = jnp.logical_and(gt < 1.0, gt > -0.5).astype(jnp.float32)
    neg_weights = jnp.power(1.0 - gt, 4)
    pos_l = jnp.log(pred) * jnp.power(1.0 - pred, 2) * pos_inds
    neg_l = jnp.log(1.0 - pred) * jnp.power(pred, 2) * neg_inds * neg_weights
    if cls_weights is not None:
        cw = jnp.asarray(cls_weights, jnp.float32)[..., None, None]
        pos_l = pos_l * cw
        neg_l = neg_l * cw
    num_pos = pos_inds.sum()
    pos_s = pos_l.sum()
    neg_s = neg_l.sum()
    return jnp.where(num_pos == 0.0, -neg_s,
                     -(pos_s + neg_s) / jnp.maximum(num_pos, 1.0))


def _make_inputs(key, B, C, H, W):
    k1, k2, k3, k4 = jax.random.split(key, 4)
    pred = jax.nn.sigmoid(jax.random.normal(k1, (B, C, H, W), jnp.float32))
    gt = jax.random.uniform(k2, (B, C, H, W), dtype=jnp.float32, maxval=0.95)
    pos_mask = jax.random.uniform(k3, (B, C, H, W)) < 0.03   # exact 1.0 peaks
    ign_mask = jax.random.uniform(k4, (B, C, H, W)) < 0.03   # gt = -1 ignore
    gt = jnp.where(pos_mask, 1.0, gt)
    gt = jnp.where(jnp.logical_and(ign_mask, jnp.logical_not(pos_mask)), -1.0, gt)
    return pred, gt


if __name__ == "__main__":
    key = jax.random.PRNGKey(0)
    ka, kb = jax.random.split(key)

    # Case 1: B*C multiple of 8, H*W multiple of 128 (no padding path).
    pred1, gt1 = _make_inputs(ka, 2, 4, 16, 16)
    cls_w1 = jnp.array([1.0, 2.0, 0.5, 1.5], jnp.float32)

    # Case 2: ragged rows / lanes (exercises the neutral-padding path).
    pred2, gt2 = _make_inputs(kb, 2, 3, 16, 12)

    # Case 3: no positives at all (exercises the num_pos == 0 branch).
    gt3 = jnp.minimum(gt1, 0.95)

    for pred, gt, cw in ((pred1, gt1, None),
                         (pred1, gt1, cls_w1),
                         (pred2, gt2, None),
                         (pred1, gt3, None)):
        loss = jax.block_until_ready(focal_loss(pred, gt, cw))
        ref = _neg_loss_ref(pred, gt, cw)
        assert jnp.isfinite(loss), loss
        assert jnp.allclose(loss, ref, rtol=1e-4, atol=1e-5), (loss, ref)

    print("KERNEL_OK")
</pallas_src>

<mosaic_0001>
module attributes {stable_mosaic.version = 11 : i64} {
  func.func @_focal_loss_kernel(%arg0: i32, %arg1: i32, %arg2: i32, %arg3: memref<8x256xf32, #tpu.memory_space<vmem>>, %arg4: memref<8x256xf32, #tpu.memory_space<vmem>>, %arg5: memref<8x1xf32, #tpu.memory_space<vmem>>, %arg6: memref<1x8x128xf32, #tpu.memory_space<vmem>>, %arg7: memref<1x8x128xf32, #tpu.memory_space<vmem>>, %arg8: memref<8x1xf32, #tpu.memory_space<vmem>>, %arg9: memref<8x1xf32, #tpu.memory_space<vmem>>) attributes {dimension_semantics = [#tpu.dimension_semantics<parallel>, #tpu.dimension_semantics<arbitrary>, #tpu.dimension_semantics<arbitrary>], iteration_bounds = array<i64: 2, 1, 1>, scalar_prefetch = 0 : i64, scratch_operands = 2 : i64, tpu.core_type = #tpu.core_type<tc>, window_params = [{transform_indices = @transform_0, window_bounds = array<i64: 8, 256>}, {transform_indices = @transform_1, window_bounds = array<i64: 8, 256>}, {transform_indices = @transform_2, window_bounds = array<i64: 8, 1>}, {transform_indices = @transform_3, window_bounds = array<i64: 1, 8, 128>}, {transform_indices = @transform_4, window_bounds = array<i64: 1, 8, 128>}]} {
    %c0_i32 = arith.constant 0 : i32
    %0 = arith.cmpi eq, %arg1, %c0_i32 : i32
    %c0_i32_0 = arith.constant 0 : i32
    %1 = arith.cmpi eq, %arg2, %c0_i32_0 : i32
    %2 = arith.andi %0, %1 : i1
    %3 = arith.extui %2 : i1 to i32
    %c0_i32_1 = arith.constant 0 : i32
    %4 = arith.cmpi ne, %3, %c0_i32_1 : i32
    scf.if %4 {
      %cst_27 = arith.constant 0.000000e+00 : f32
      %50 = vector.broadcast %cst_27 : f32 to vector<8x1xf32>
      %c0_28 = arith.constant 0 : index
      %c0_29 = arith.constant 0 : index
      %51 = vector.load %arg8[%c0_28, %c0_29] : memref<8x1xf32, #tpu.memory_space<vmem>>, vector<8x1xf32>
      tpu.vector_store %arg8[%c0_28, %c0_29], %50 {strides = array<i32>} : memref<8x1xf32, #tpu.memory_space<vmem>>, vector<8x1xf32>,
      %cst_30 = arith.constant 0.000000e+00 : f32
      %52 = vector.broadcast %cst_30 : f32 to vector<8x1xf32>
      %c0_31 = arith.constant 0 : index
      %c0_32 = arith.constant 0 : index
      %53 = vector.load %arg9[%c0_31, %c0_32] : memref<8x1xf32, #tpu.memory_space<vmem>>, vector<8x1xf32>
      tpu.vector_store %arg9[%c0_31, %c0_32], %52 {strides = array<i32>} : memref<8x1xf32, #tpu.memory_space<vmem>>, vector<8x1xf32>,
    } else {
    }
    %c0 = arith.constant 0 : index
    %c0_2 = arith.constant 0 : index
    %5 = vector.load %arg3[%c0, %c0_2] : memref<8x256xf32, #tpu.memory_space<vmem>>, vector<8x256xf32>
    %c0_3 = arith.constant 0 : index
    %c0_4 = arith.constant 0 : index
    %6 = vector.load %arg4[%c0_3, %c0_4] : memref<8x256xf32, #tpu.memory_space<vmem>>, vector<8x256xf32>
    %cst = arith.constant 1.000000e+00 : f32
    %7 = vector.broadcast %cst : f32 to vector<8x256xf32>
    %8 = arith.subf %7, %5 : vector<8x256xf32>
    %cst_5 = arith.constant 1.000000e+00 : f32
    %9 = vector.broadcast %cst_5 : f32 to vector<8x256xf32>
    %10 = arith.subf %9, %6 : vector<8x256xf32>
    %cst_6 = arith.constant 1.000000e+00 : f32
    %11 = vector.broadcast %cst_6 : f32 to vector<8x256xf32>
    %12 = arith.cmpf oeq, %6, %11 : vector<8x256xf32>
    %cst_7 = arith.constant 1.000000e+00 : f32
    %13 = vector.broadcast %cst_7 : f32 to vector<8x256xf32>
    %14 = arith.cmpf olt, %6, %13 : vector<8x256xf32>
    %cst_8 = arith.constant -5.000000e-01 : f32
    %15 = vector.broadcast %cst_8 : f32 to vector<8x256xf32>
    %16 = arith.cmpf ogt, %6, %15 : vector<8x256xf32>
    %17 = arith.andi %14, %16 : vector<8x256xi1>
    %18 = arith.mulf %10, %10 : vector<8x256xf32>
    %19 = math.log %5 : vector<8x256xf32>
    %20 = arith.mulf %8, %8 : vector<8x256xf32>
    %21 = arith.mulf %19, %20 : vector<8x256xf32>
    %22 = math.log %8 : vector<8x256xf32>
    %23 = arith.mulf %5, %5 : vector<8x256xf32>
    %24 = arith.mulf %22, %23 : vector<8x256xf32>
    %25 = arith.mulf %18, %18 : vector<8x256xf32>
    %26 = arith.mulf %24, %25 : vector<8x256xf32>
    %cst_9 = arith.constant 0.000000e+00 : f32
    %27 = vector.broadcast %cst_9 : f32 to vector<8x256xf32>
    %28 = arith.select %17, %26, %27 : vector<8x256xi1>, vector<8x256xf32>
    %29 = arith.select %12, %21, %28 : vector<8x256xi1>, vector<8x256xf32>
    %cst_10 = arith.constant dense<0.000000e+00> : vector<8xf32>
    %30 = vector.multi_reduction <add>, %29, %cst_10 [1] : vector<8x256xf32> to vector<8xf32>
    %31 = vector.shape_cast %30 : vector<8xf32> to vector<8x1xf32>
    %cst_11 = arith.constant 1.000000e+00 : f32
    %cst_12 = arith.constant 0.000000e+00 : f32
    %32 = vector.broadcast %cst_11 : f32 to vector<8x256xf32>
    %33 = vector.broadcast %cst_12 : f32 to vector<8x256xf32>
    %34 = arith.select %12, %32, %33 : vector<8x256xi1>, vector<8x256xf32>
    %cst_13 = arith.constant dense<0.000000e+00> : vector<8xf32>
    %35 = vector.multi_reduction <add>, %34, %cst_13 [1] : vector<8x256xf32> to vector<8xf32>
    %36 = vector.shape_cast %35 : vector<8xf32> to vector<8x1xf32>
    %c0_14 = arith.constant 0 : index
    %c0_15 = arith.constant 0 : index
    %37 = vector.load %arg8[%c0_14, %c0_15] : memref<8x1xf32, #tpu.memory_space<vmem>>, vector<8x1xf32>
    %c0_16 = arith.constant 0 : index
    %c0_17 = arith.constant 0 : index
    %38 = vector.load %arg5[%c0_16, %c0_17] : memref<8x1xf32, #tpu.memory_space<vmem>>, vector<8x1xf32>
    %39 = arith.mulf %31, %38 : vector<8x1xf32>
    %40 = arith.addf %37, %39 : vector<8x1xf32>
    %c0_18 = arith.constant 0 : index
    %c0_19 = arith.constant 0 : index
    %41 = vector.load %arg8[%c0_18, %c0_19] : memref<8x1xf32, #tpu.memory_space<vmem>>, vector<8x1xf32>
    tpu.vector_store %arg8[%c0_18, %c0_19], %40 {strides = array<i32>} : memref<8x1xf32, #tpu.memory_space<vmem>>, vector<8x1xf32>,
    %c0_20 = arith.constant 0 : index
    %c0_21 = arith.constant 0 : index
    %42 = vector.load %arg9[%c0_20, %c0_21] : memref<8x1xf32, #tpu.memory_space<vmem>>, vector<8x1xf32>
    %43 = arith.addf %42, %36 : vector<8x1xf32>
    %c0_22 = arith.constant 0 : index
    %c0_23 = arith.constant 0 : index
    %44 = vector.load %arg9[%c0_22, %c0_23] : memref<8x1xf32, #tpu.memory_space<vmem>>, vector<8x1xf32>
    tpu.vector_store %arg9[%c0_22, %c0_23], %43 {strides = array<i32>} : memref<8x1xf32, #tpu.memory_space<vmem>>, vector<8x1xf32>,
    %c0_i32_24 = arith.constant 0 : i32
    %45 = arith.cmpi eq, %arg1, %c0_i32_24 : i32
    %c0_i32_25 = arith.constant 0 : i32
    %46 = arith.cmpi eq, %arg2, %c0_i32_25 : i32
    %47 = arith.andi %45, %46 : i1
    %48 = arith.extui %47 : i1 to i32
    %c0_i32_26 = arith.constant 0 : i32
    %49 = arith.cmpi ne, %48, %c0_i32_26 : i32
    scf.if %49 {
      %c0_27 = arith.constant 0 : index
      %c0_28 = arith.constant 0 : index
      %50 = vector.load %arg8[%c0_27, %c0_28] : memref<8x1xf32, #tpu.memory_space<vmem>>, vector<8x1xf32>
      %51 = vector.shape_cast %50 : vector<8x1xf32> to vector<1x8x1xf32>
      %cst_29 = arith.constant dense<0.000000e+00> : vector<1xf32>
      %52 = vector.multi_reduction <add>, %51, %cst_29 [1, 2] : vector<1x8x1xf32> to vector<1xf32>
      %53 = vector.shape_cast %52 : vector<1xf32> to vector<1x1x1xf32>
      %54 = vector.extract %53[0, 0, 0] : f32 from vector<1x1x1xf32>
      %c0_30 = arith.constant 0 : index
      %c0_31 = arith.constant 0 : index
      %55 = vector.load %arg9[%c0_30, %c0_31] : memref<8x1xf32, #tpu.memory_space<vmem>>, vector<8x1xf32>
      %56 = vector.shape_cast %55 : vector<8x1xf32> to vector<1x8x1xf32>
      %cst_32 = arith.constant dense<0.000000e+00> : vector<1xf32>
      %57 = vector.multi_reduction <add>, %56, %cst_32 [1, 2] : vector<1x8x1xf32> to vector<1xf32>
      %58 = vector.shape_cast %57 : vector<1xf32> to vector<1x1x1xf32>
      %59 = vector.extract %58[0, 0, 0] : f32 from vector<1x1x1xf32>
      %60 = vector.broadcast %54 : f32 to vector<1x8x128xf32>
      %c0_33 = arith.constant 0 : index
      %c0_34 = arith.constant 0 : index
      %c0_35 = arith.constant 0 : index
      %61 = vector.load %arg6[%c0_33, %c0_34, %c0_35] : memref<1x8x128xf32, #tpu.memory_space<vmem>>, vector<1x8x128xf32>
      tpu.vector_store %arg6[%c0_33, %c0_34, %c0_35], %60 {strides = array<i32>} : memref<1x8x128xf32, #tpu.memory_space<vmem>>, vector<1x8x128xf32>,
      %62 = vector.broadcast %59 : f32 to vector<1x8x128xf32>
      %c0_36 = arith.constant 0 : index
      %c0_37 = arith.constant 0 : index
      %c0_38 = arith.constant 0 : index
      %63 = vector.load %arg7[%c0_36, %c0_37, %c0_38] : memref<1x8x128xf32, #tpu.memory_space<vmem>>, vector<1x8x128xf32>
      tpu.vector_store %arg7[%c0_36, %c0_37, %c0_38], %62 {strides = array<i32>} : memref<1x8x128xf32, #tpu.memory_space<vmem>>, vector<1x8x128xf32>,
    } else {
    }
    return
  }
  func.func @transform_0(%arg0: i32, %arg1: i32, %arg2: i32) -> (i32, i32) {
    %c1_i32 = arith.constant 1 : i32
    %0 = arith.muli %arg0, %c1_i32 : i32
    %1 = arith.addi %0, %arg1 : i32
    %c0_i32 = arith.constant 0 : i32
    return %1, %arg2 : i32, i32
  }
  func.func @transform_1(%arg0: i32, %arg1: i32, %arg2: i32) -> (i32, i32) {
    %c1_i32 = arith.constant 1 : i32
    %0 = arith.muli %arg0, %c1_i32 : i32
    %1 = arith.addi %0, %arg1 : i32
    %c0_i32 = arith.constant 0 : i32
    return %1, %arg2 : i32, i32
  }
  func.func @transform_2(%arg0: i32, %arg1: i32, %arg2: i32) -> (i32, i32) {
    %c1_i32 = arith.constant 1 : i32
    %0 = arith.muli %arg0, %c1_i32 : i32
    %1 = arith.addi %0, %arg1 : i32
    %c0_i32 = arith.constant 0 : i32
    %c0_i32_0 = arith.constant 0 : i32
    return %1, %c0_i32 : i32, i32
  }
  func.func @transform_3(%arg0: i32, %arg1: i32, %arg2: i32) -> (i32, i32, i32) {
    %c0_i32 = arith.constant 0 : i32
    %c0_i32_0 = arith.constant 0 : i32
    %c0_i32_1 = arith.constant 0 : i32
    return %arg0, %c0_i32, %c0_i32_0 : i32, i32, i32
  }
  func.func @transform_4(%arg0: i32, %arg1: i32, %arg2: i32) -> (i32, i32, i32) {
    %c0_i32 = arith.constant 0 : i32
    %c0_i32_0 = arith.constant 0 : i32
    %c0_i32_1 = arith.constant 0 : i32
    return %arg0, %c0_i32, %c0_i32_0 : i32, i32, i32
  }
}

</mosaic_0001>

<bundles_post_ra>
// kernel: tpu_custom_call.1
= control target key start
LH: loop header
LB: loop body
LE: loop exit
PB: predicated region body
PF: predicated region fallthrough
CT: control target
= control target key end

     0   :  { %10 = vsyncpa [#allocation5], 0  ;;  %s1197_s0 = inlined_call_operand.hbm [shape: f32[16,256], index: 0, kind: input, shape index: {}]   ;;  %s1198_s1 = inlined_call_operand.hbm [shape: f32[16,256], index: 1, kind: input, shape index: {}]   ;;  %s1199_s2 = inlined_call_operand.vmem [shape: f32[16,1], index: 2, kind: input, shape index: {}]   ;;  %s1200_s3 = inlined_call_operand.hbm [shape: f32[2,8,128], index: 3, kind: output, shape index: {0}]   ;;  %s1201_s4 = inlined_call_operand.hbm [shape: f32[2,8,128], index: 4, kind: output, shape index: {1}]  }
   0x1   :  { %12 = vsyncpa [#allocation5 + $0x1], 0 }
   0x2   :  { %13 = vsyncpa [#allocation8], 0 }
   0x3   :  { %15 = vsyncpa [#allocation8 + $0x1], 0 }
   0x4   :  { %16 = vsyncpa [#allocation6], 0 }
   0x5   :  { %18 = vsyncpa [#allocation6 + $0x1], 0 }
   0x6   :  { %19 = vsyncpa [#allocation11], 0 }
   0x7   :  { %21 = vsyncpa [#allocation11 + $0x1], 0  ;;  %s927_s15 = smov 0   ;;  %s929_s16 = smov 0  }
   0x8   :  { %s931_s17 = smov 0   ;;  %s933_s18 = smov 0  }
   0x9   :  { %s935_s19 = smov 0   ;;  %s937_s20 = smov 0  }
   0xa LB: > { %s608_s21 = sadd.s32 4294967295, %s895_s20   ;;  %s609_s22 = sadd.s32 4294967294, %s895_s20   ;;  %s895_s20 = sphi %s937_s20, %s27_s20   ;;  %s891_s19 = sphi %s935_s19, %s1221_s19   ;;  %s887_s18 = sphi %s933_s18, %s1220_s18   ;;  %s883_s17 = sphi %s931_s17, %s1219_s17   ;;  %s879_s16 = sphi %s929_s16, %s1218_s16   ;;  %s875_s15 = sphi %s927_s15, %s1217_s15  }
   0xb   : > { %s46_s23 = sadd.s32 1, %s891_s19  ;;  %s57_s24 = sadd.s32 1, %s883_s17 }
   0xc   : > { %p48_p0 = scmp.ge.s32.totalorder %s46_s23, 2  ;;  %p64_p1 = scmp.ne.s32.totalorder %s883_s17, %s879_s16 }
   0xd   : > { %p65_p2 = scmp.eq.s32.totalorder %s895_s20, 0  ;;  %p70_p3 = scmp.ne.s32.totalorder %s879_s16, %s875_s15 }
   0xe   : > { %s1223_s23 = smov (%p48_p0, %s46_s23), 0  ;;  %p71_p5 = scmp.eq.s32.totalorder %s608_s21, 0 }
   0xf   : > { %p968_p4 = por %p65_p2, %p64_p1  ;;  %s52_s26 = ssub.s32 %s891_s19, %s1223_s23 }
  0x10   : > { %p152_p6 = scmp.eq.s32.totalorder %s608_s21, 1  ;;  %p55_p7 = scmp.eq.s32.totalorder %s52_s26, 0 }
  0x11   : > { %p974_p8 = por %p71_p5, %p70_p3  ;;  %p158_p10 = scmp.eq.s32.totalorder %s609_s22, 1 }
  0x12   : > { %p978_p9 = por %p152_p6, %p64_p1  ;;  %p658_p13 = scmp.lt.s32.totalorder %s895_s20, 2 }
  0x13   : > { %s1205_s27 = scalar_select %p974_p8, 1, 0 }
  0x14   : > { %s1206_s28 = scalar_select %p978_p9, 1, 0 }
  0x15   : > { %s983_s29 = scalar_select %p55_p7, %s883_s17, %s57_s24  }
  0x16   : > { %p985_p11 = por %p158_p10, %p70_p3  ;;  %s992_s5 = sand.u32 1, %s883_s17  }
  0x17   : > { %s612_s6 = sshll.u32 %s992_s5, 4  ;;  %s630_s7 = sshll.u32 %s891_s19, 8 }
  0x18   : > { %s1207_s30 = scalar_select %p985_p11, 1, 0 }
  0x19   : > { %s1001_s10 = scalar_lea.hbm %s1197_s0, %s630_s7  ;;  %s208_s11 = scalar_lea.vmem [#allocation4], %s612_s6 }
  0x1a   : > { %s219_s12 = sshll.u32 %s208_s11, 4  ;;  %p1009_p0 = pnand %p658_p13, %p968_p4  ;;  %s1005_s12 = int_to_ptr.vmem [resolvable:$true] %s219_s12 }
  0x1b   : > { %s205_s14 = scalar_lea.sflag [#allocation5], %s992_s5  ;;  %s717_s21 = scalar_lea.hbm %s1001_s10, 256 }
  0x1c   : > { %p718_p3 = scmp.ne.s32.totalorder %s1001_s10, %s717_s21  ;;  %p719_p5 = pneg %p1009_p0 }
  0x1d   : > { %s722_s25 = scalar_lea.hbm %s1197_s0, 512  ;;  %p723_p4 = scmp.lt.u32.totalorder %s1001_s10, %s1197_s0 }
  0x1e   : > { %p720_p6 = pnand %p719_p5, %p718_p3  ;;  %p724_p10 = scmp.lt.u32.totalorder %s722_s25, %s717_s21 }
  0x1f   : > { %p726_p12 = scmp.lt.u32.totalorder %s717_s21, %s1001_s10 }
  0x20   : > { %p721_p7 = pneg %p720_p6  ;;  %p725_p13 = por %p724_p10, %p723_p4 }
  0x22   : > { %p727_p1 = por %p726_p12, %p725_p13 }
  0x24   : > { %p728_p2 = pnand %p727_p1, %p721_p7 }
  0x26   : > { %731 = shalt.err (!%p728_p2)
}
  0x27   : > { %s732_s9 = scalar_lea.vmem %s1005_s12, 256  ;;  %s897_s11 = smov [#allocation4]  }
  0x28   : > { %p733_p3 = scmp.ne.s32.totalorder %s1005_s12, %s732_s9  ;;  %s737_s22 = sshll.u32 %s897_s11, 4  ;;  %s738_s22 = int_to_ptr.vmem [resolvable:$false] %s737_s22 }
  0x29   : > { %s739_s24 = scalar_lea.vmem %s738_s22, 512  ;;  %p740_p9 = scmp.lt.s32.totalorder %s1005_s12, %s738_s22 }
  0x2a   : > { %p735_p6 = pnand %p733_p3, %p719_p5  ;;  %p741_p4 = scmp.lt.s32.totalorder %s739_s24, %s732_s9 }
  0x2c   : > { %p736_p11 = pneg %p735_p6  ;;  %p742_p10 = por %p741_p4, %p740_p9 }
  0x2e   : > { %p743_p12 = pnand %p742_p10, %p736_p11 }
  0x30   : > { %746 = shalt.err (!%p743_p12)
}
  0x31   : > { %647 = dma.hbm_to_vmem [thread:$0]  (!%p1009_p0), %s1001_s10, 256, %s1005_s12, %s205_s14  }
  0x32   : > { %p1209_p1 = scmp.lt.s32.totalorder %s895_s20, 3  ;;  %p1210_p2 = scmp.ge.s32.totalorder %s895_s20, 1 }
  0x33   : > { %s1054_s8 = scalar_lea.hbm %s1198_s1, %s630_s7  ;;  %s230_s9 = scalar_lea.vmem [#allocation7], %s612_s6 }
  0x34   : > { %p1045_p7 = pnand %p1210_p2, %p1209_p1  ;;  %s241_s11 = sshll.u32 %s230_s9, 4  ;;  %s242_s11 = int_to_ptr.vmem [resolvable:$true] %s241_s11 }
  0x35   : > { %s227_s10 = scalar_lea.sflag [#allocation8], %s992_s5  ;;  %s747_s12 = scalar_lea.hbm %s1054_s8, 256 }
  0x36   : > { %s1211_s21 = scalar_select %p1045_p7, 1, 0 }
  0x37   : > { %p748_p9 = scmp.ne.s32.totalorder %s1054_s8, %s747_s12  ;;  %s752_s7 = scalar_lea.hbm %s1198_s1, 512 }
  0x38   : > { %p753_p3 = scmp.lt.u32.totalorder %s1054_s8, %s1198_s1  ;;  %p754_p6 = scmp.lt.u32.totalorder %s752_s7, %s747_s12 }
  0x39   : > { %p750_p11 = pnand %p748_p9, %p719_p5  ;;  %p756_p10 = scmp.lt.u32.totalorder %s747_s12, %s1054_s8 }
  0x3a   : > { %p755_p4 = por %p754_p6, %p753_p3 }
  0x3b   : > { %p751_p13 = pneg %p750_p11 }
  0x3c   : > { %p757_p12 = por %p756_p10, %p755_p4 }
  0x3e   : > { %p758_p1 = pnand %p757_p12, %p751_p13 }
  0x40   : > { %761 = shalt.err (!%p758_p1)
}
  0x41   : > { %s762_s5 = scalar_lea.vmem %s242_s11, 256  ;;  %s898_s6 = smov [#allocation7]  }
  0x42   : > { %p763_p2 = scmp.ne.s32.totalorder %s242_s11, %s762_s5  ;;  %s767_s26 = sshll.u32 %s898_s6, 4  ;;  %s768_s26 = int_to_ptr.vmem [resolvable:$false] %s767_s26 }
  0x43   : > { %s769_s9 = scalar_lea.vmem %s768_s26, 512  ;;  %p770_p8 = scmp.lt.s32.totalorder %s242_s11, %s768_s26 }
  0x44   : > { %p765_p9 = pnand %p763_p2, %p719_p5  ;;  %p771_p7 = scmp.lt.s32.totalorder %s769_s9, %s762_s5 }
  0x46   : > { %p766_p11 = pneg %p765_p9  ;;  %p772_p3 = por %p771_p7, %p770_p8 }
  0x48   : > { %p773_p6 = pnand %p772_p3, %p766_p11 }
  0x4a   : > { %776 = shalt.err (!%p773_p6)
}
  0x4b   : > { %650 = dma.hbm_to_vmem [thread:$0]  (!%p1009_p0), %s1054_s8, 256, %s242_s11, %s227_s10  }
  0x4c   : > { %p1212_p13 = scmp.ne.s32.totalorder %s1211_s21, 0 }
  0x4d   : > { %s1081_s12 = sand.u32 (!%p1212_p13), 1, %s879_s16   ;;  %p1213_p5 = scmp.ne.s32.totalorder (!%p1212_p13), %s1205_s27, 0 }
  0x4e   : > { %259 = sbr.rel (%p1212_p13) target bundleno = 511 (0x1ff), region = 32  ;;  %s619_s14 = sshll.u32 (!%p1212_p13), %s1081_s12, 4 }
  0x4f   : > { %s262_s22 = scalar_lea.sflag (!%p1212_p13), [#allocation5], %s1081_s12  ;;  %s265_s7 = scalar_lea.vmem (!%p1212_p13), [#allocation4], %s619_s14 }
  0x55   : > { %858 = dma.done.wait (%p1213_p5), %s262_s22, 256  }
  0x56   : > { %860 = vsyncadd (%p1213_p5), %s262_s22, 4294967040  ;;  %s271_s13 = scalar_lea.sflag [#allocation8], %s1081_s12  ;;  %s274_s8 = scalar_lea.vmem [#allocation7], %s619_s14 }
  0x57   : > { %862 = dma.done.wait (%p1213_p5), %s271_s13, 256  }
  0x58   : > { %864 = vsyncadd (%p1213_p5), %s271_s13, 4294967040  ;;  %vm330_vm0 = vcmask 7168   ;;  %v899_v0 = vmov 0.0   ;;  %v333_v1 = vld [vmem:[%s265_s7] sm:$0xff]  ;;  %v334_v2 = vld [vmem:[%s265_s7 + $0x8] sm:$0xff]  ;;  %p319_p8 = scmp.lt.s32.totalorder %s887_s18, 1 }
  0x59   : > { %331 = vst.msk [vmem:[#allocation2] sm:$0xff] %vm330_vm0, %v899_v0  ;;  %332 = vst.msk [vmem:[#allocation3] sm:$0xff] %vm330_vm0, %v899_v0  ;;  %v337_v3 = vsub.f32 1.0, %v333_v1  ;;  %v338_v4 = vsub.f32 1.0, %v334_v2  ;;  %709 = vlog2.f32 %v333_v1  ;;  %v335_v5 = vld [vmem:[%s274_s8] sm:$0xff]  ;;  %v336_v6 = vld [vmem:[%s274_s8 + $0x8] sm:$0xff]  ;;  %v363_v13 = vmul.f32 %v333_v1, %v333_v1 }
  0x5a   : > { %711 = vlog2.f32 %v334_v2  ;;  %v339_v7 = vsub.f32 1.0, %v335_v5  ;;  %v340_v8 = vsub.f32 1.0, %v336_v6  ;;  %vm343_vm1 = vcmp.lt.f32.partialorder %v335_v5, 1.0  ;;  %s320_s27 = scalar_select %p319_p8, %s887_s18, 1 }
  0x5b   : > { %713 = vlog2.f32 %v337_v3  ;;  %vm345_vm2 = vcmp.gt.f32.partialorder %v335_v5, -0.5  ;;  %v355_v16 = vmul.f32 %v337_v3, %v337_v3  ;;  %v364_v17 = vmul.f32 %v334_v2, %v334_v2  ;;  %s621_s25 = sshll.u32 %s1081_s12, 3  ;;  %s626_s5 = sshll.u32 %s887_s18, 7 }
  0x5c   : > { %715 = vlog2.f32 %v338_v4  ;;  %v349_v9 = vmul.f32 %v339_v7, %v339_v7  ;;  %v350_v11 = vmul.f32 %v340_v8, %v340_v8  ;;  %v356_v20 = vmul.f32 %v338_v4, %v338_v4  ;;  %vm347_vm5 = vmand %vm343_vm1, %vm345_vm2  ;;  %s623_s21 = sshll.u32 %s320_s27, 3  ;;  %s306_s6 = scalar_lea.vmem [#allocation9], %s621_s25 }
  0x5d   : > { %vm344_vm3 = vcmp.lt.f32.partialorder %v336_v6, 1.0  ;;  %vm346_vm4 = vcmp.gt.f32.partialorder %v336_v6, -0.5  ;;  %vm341_vm6 = vcmp.eq.f32.partialorder %v335_v5, 1.0  ;;  %vm342_vm8 = vcmp.eq.f32.partialorder %v336_v6, 1.0  ;;  %s322_s24 = scalar_lea.vmem %s1199_s2, %s623_s21  ;;  %s439_s26 = sshll.u32 %s306_s6, 4  ;;  %s1118_s26 = int_to_ptr.vmem [resolvable:$true] %s439_s26 }
  0x5e   : > { %v367_v22 = vmul.f32 %v349_v9, %v349_v9  ;;  %v368_v24 = vmul.f32 %v350_v11, %v350_v11  ;;  %vm348_vm7 = vmand %vm344_vm3, %vm346_vm4  ;;  %v378_v35 = vsel %vm341_vm6, 1.0, %v899_v0  ;;  %v379_v36 = vsel %vm342_vm8, 1.0, %v899_v0  ;;  %v384_v39 = vld [vmem:[%s322_s24] sm:$0xff]  ;;  %s1108_s9 = scalar_lea.vmem [#allocation10], %s621_s25  ;;  %s1116_s13 = scalar_lea.hbm %s1200_s3, %s626_s5 }
  0x5f   : > { %v380_v38 = vadd.f32 %v379_v36, %v378_v35  ;;  %s452_s14 = sshll.u32 %s1108_s9, 4  ;;  %s421_s27 = scalar_lea.sflag [#allocation6], %s1081_s12  ;;  %s1120_s14 = int_to_ptr.vmem [resolvable:$true] %s452_s14 }
  0x60   : > { %v383_v41 = vld [vmem:[#allocation2] sm:$0xff]  ;;  %v389_v43 = vld [vmem:[#allocation3] sm:$0xff]  ;;  %s777_s21 = scalar_lea.vmem %s1118_s26, 128  ;;  %p1214_p7 = scmp.ne.s32.totalorder %s1206_s28, 0 }
  0x61   : > { %p778_p0 = scmp.ne.s32.totalorder %s1118_s26, %s777_s21  ;;  %s900_s11 = smov [#allocation9]  }
  0x62   : > { %s781_s10 = sshll.u32 %s900_s11, 4  ;;  %s782_s10 = int_to_ptr.vmem [resolvable:$false] %s781_s10 }
  0x63   : > { %v710_v10 = vpop.eup %709  ;;  %p779_p4 = pnand %p778_p0, %p1214_p7  ;;  %s783_s24 = scalar_lea.vmem %s782_s10, 256 }
  0x64   : > { %v712_v12 = vpop.eup %711  ;;  %v352_v15 = vmul.f32 0.6931472, %v710_v10  ;;  %p784_p12 = scmp.lt.s32.totalorder %s1118_s26, %s782_s10  ;;  %p785_p1 = scmp.lt.s32.totalorder %s783_s24, %s777_s21 }
  0x65   : > { %v714_v14 = vpop.eup %713  ;;  %v354_v19 = vmul.f32 0.6931472, %v712_v12  ;;  %p780_p10 = pneg %p779_p4 }
  0x66   : > { %v716_v18 = vpop.eup %715  ;;  %v360_v21 = vmul.f32 0.6931472, %v714_v14  ;;  %v357_v26 = vmul.f32 %v355_v16, %v352_v15  ;;  %p786_p2 = por %p785_p1, %p784_p12 }
  0x67   : > { %v362_v23 = vmul.f32 0.6931472, %v716_v18  ;;  %v358_v28 = vmul.f32 %v356_v20, %v354_v19 }
  0x68   : > { %v365_v25 = vmul.f32 %v363_v13, %v360_v21  ;;  %p787_p9 = pnand %p786_p2, %p780_p10 }
  0x69   : > { %v366_v27 = vmul.f32 %v364_v17, %v362_v23 }
  0x6a   : > { %v369_v29 = vmul.f32 %v367_v22, %v365_v25 }
  0x6b   : > { %v370_v30 = vmul.f32 %v368_v24, %v366_v27 }
  0x6c   : > { %v371_v31 = vsel %vm347_vm5, %v369_v29, 0.0 }
  0x6d   : > { %v372_v32 = vsel %vm348_vm7, %v370_v30, 0.0  ;;  %v373_v33 = vsel %vm341_vm6, %v357_v26, %v371_v31 }
  0x6e   : > { %v374_v34 = vsel %vm342_vm8, %v358_v28, %v372_v32 }
  0x6f   : > { %v375_v37 = vadd.f32 %v374_v34, %v373_v33 }
  0x71   : > { %376 = vadd.xlane.f32.xlu0 %v375_v37 }
  0x75   : > { %381 = vadd.xlane.f32.xlu0 %v380_v38 }
  0xfe   : > { %v377_v40 = vpop.xlane.xlu0 %376 }
  0xff   : > { %v385_v42 = vmul.f32 %v384_v39, %v377_v40 }
 0x101   : > { %v386_v44 = vadd.f32 %v385_v42, %v383_v41 }
 0x102   : > { %v382_v45 = vpop.xlane.xlu0 %381 }
 0x103   : > { %388 = vst.msk [vmem:[#allocation2] sm:$0xff] %vm330_vm0, %v386_v44  ;;  %v390_v46 = vadd.f32 %v389_v43, %v382_v45 }
 0x105   : > { %391 = vst.msk [vmem:[#allocation3] sm:$0xff] %vm330_vm0, %v390_v46 }
 0x10a   : > { %v394_v47 = vld [vmem:[#allocation2] sm:$0xff] }
 0x10b   : > { %v395_v48 = vsel %vm330_vm0, %v394_v47, 0.0 }
 0x10c   : > { %396 = vadd.xlane.f32.xlu1 %v395_v48  ;;  %v405_v49 = vld [vmem:[#allocation3] sm:$0xff] }
 0x10d   : > { %v406_v50 = vsel %vm330_vm0, %v405_v49, 0.0 }
 0x110   : > { %407 = vadd.xlane.f32.xlu1 %v406_v50 }
 0x199   : > { %v397_v51 = vpop.xlane.xlu1 %396 }
 0x19a   : > { %v398_v52 = vrot.slane %v397_v51, 4 }
 0x19c   : > { %v399_v53 = vadd.f32 %v398_v52, %v397_v51 }
 0x19d   : > { %v408_v54 = vpop.xlane.xlu1 %407 }
 0x19e   : > { %v400_v55 = vrot.slane %v399_v53, 2  ;;  %v409_v56 = vrot.slane %v408_v54, 4 }
 0x1a0   : > { %v410_v57 = vadd.f32 %v409_v56, %v408_v54  ;;  %v401_v58 = vadd.f32 %v400_v55, %v399_v53 }
 0x1a2   : > { %v411_v59 = vrot.slane %v410_v57, 2  ;;  %v402_v60 = vrot.slane %v401_v58, 1 }
 0x1a4   : > { %v412_v61 = vadd.f32 %v411_v59, %v410_v57  ;;  %v403_v62 = vadd.f32 %v402_v60, %v401_v58 }
 0x1a6   : > { %632 = vpush %v403_v62  ;;  %v413_v63 = vrot.slane %v412_v61, 1 }
 0x1a8   : > { %v414_v0 = vadd.f32 %v413_v63, %v412_v61 }
 0x1aa   : > { %634 = vpush %v414_v0 }
 0x1d7   : > { %s633_s8 = spop %632 }
 0x1d8   : > { %v416_v1 = vstv %s633_s8 }
 0x1d9   : > { %417 = vst [vmem:[%s306_s6] sm:$0xff] %v416_v1 }
 0x1da   : > { %790 = shalt.err (!%p787_p9)
}
 0x1db   : > { %s791_s25 = scalar_lea.hbm %s1116_s13, 128  ;;  %s795_s7 = scalar_lea.hbm %s1200_s3, 256 }
 0x1dc   : > { %p792_p11 = scmp.ne.s32.totalorder %s1116_s13, %s791_s25  ;;  %p796_p13 = scmp.lt.u32.totalorder %s1116_s13, %s1200_s3 }
 0x1dd   : > { %p797_p5 = scmp.lt.u32.totalorder %s795_s7, %s791_s25  ;;  %p799_p0 = scmp.lt.u32.totalorder %s791_s25, %s1116_s13 }
 0x1de   : > { %p793_p3 = pnand %p792_p11, %p1214_p7 }
 0x1df   : > { %p798_p8 = por %p797_p5, %p796_p13 }
 0x1e0   : > { %p794_p6 = pneg %p793_p3 }
 0x1e1   : > { %p800_p4 = por %p799_p0, %p798_p8 }
 0x1e3   : > { %p801_p10 = pnand %p800_p4, %p794_p6 }
 0x1e5   : > { %804 = shalt.err (!%p801_p10)
}
 0x1e6   : > { %640 = dma.vmem_to_hbm [thread:$0]  (%p1214_p7), %s1118_s26, 128, %s1116_s13, %s421_s27  }
 0x1e7   : > { %s635_s21 = spop %634  ;;  %s1149_s25 = scalar_lea.hbm %s1201_s4, %s626_s5 }
 0x1e8   : > { %v418_v2 = vstv %s635_s21  ;;  %s426_s6 = scalar_lea.sflag [#allocation11], %s1081_s12  ;;  %s805_s22 = scalar_lea.vmem %s1120_s14, 128 }
 0x1e9   : > { %419 = vst [vmem:[%s1108_s9] sm:$0xff] %v418_v2  ;;  %p806_p12 = scmp.ne.s32.totalorder %s1120_s14, %s805_s22  ;;  %s901_s7 = smov [#allocation10]  }
 0x1ea   : > { %s809_s8 = sshll.u32 %s901_s7, 4  ;;  %s810_s8 = int_to_ptr.vmem [resolvable:$false] %s809_s8 }
 0x1eb   : > { %p807_p1 = pnand %p806_p12, %p1214_p7  ;;  %s811_s11 = scalar_lea.vmem %s810_s8, 256 }
 0x1ec   : > { %p812_p9 = scmp.lt.s32.totalorder %s1120_s14, %s810_s8  ;;  %p813_p11 = scmp.lt.s32.totalorder %s811_s11, %s805_s22 }
 0x1ed   : > { %p808_p2 = pneg %p807_p1 }
 0x1ee   : > { %p814_p3 = por %p813_p11, %p812_p9 }
 0x1f0   : > { %p815_p6 = pnand %p814_p3, %p808_p2 }
 0x1f2   : > { %818 = shalt.err (!%p815_p6)
}
 0x1f3   : > { %s819_s18 = scalar_lea.hbm %s1149_s25, 128  ;;  %s823_s26 = scalar_lea.hbm %s1201_s4, 256 }
 0x1f4   : > { %p820_p13 = scmp.ne.s32.totalorder %s1149_s25, %s819_s18  ;;  %p824_p0 = scmp.lt.u32.totalorder %s1149_s25, %s1201_s4 }
 0x1f5   : > { %p825_p4 = scmp.lt.u32.totalorder %s823_s26, %s819_s18  ;;  %p827_p12 = scmp.lt.u32.totalorder %s819_s18, %s1149_s25 }
 0x1f6   : > { %p821_p5 = pnand %p820_p13, %p1214_p7 }
 0x1f7   : > { %p826_p10 = por %p825_p4, %p824_p0 }
 0x1f8   : > { %p822_p8 = pneg %p821_p5 }
 0x1f9   : > { %p828_p1 = por %p827_p12, %p826_p10 }
 0x1fb   : > { %p829_p2 = pnand %p828_p1, %p822_p8 }
 0x1fd   : > { %832 = shalt.err (!%p829_p2)
}
 0x1fe   : > { %641 = dma.vmem_to_hbm [thread:$0]  (%p1214_p7), %s1120_s14, 128, %s1149_s25, %s426_s6  }
 0x1ff PF: > { %s464_s27 = sand.u32 1, %s875_s15   ;;  %p1215_p9 = scmp.ne.s32.totalorder %s1207_s30, 0 }
 0x200   : > { %p1216_p11 = scmp.ge.s32.totalorder %s895_s20, 2  ;;  %s465_s21 = scalar_lea.sflag [#allocation6], %s464_s27 }
 0x202   : > { %p652_p3 = pnand %p1216_p11, %p1215_p9 }
 0x204   : > { %866 = dma.done.wait (!%p652_p3), %s465_s21, 128  }
 0x205   : > { %868 = vsyncadd (!%p652_p3), %s465_s21, 4294967168  ;;  %s474_s10 = scalar_lea.sflag [#allocation11], %s464_s27 }
 0x206   : > { %870 = dma.done.wait (!%p652_p3), %s474_s10, 128  }
 0x207   : > { %872 = vsyncadd (!%p652_p3), %s474_s10, 4294967168  ;;  %s27_s20 = sadd.s32 1, %s895_s20   ;;  %s1217_s15 = smov %s879_s16 }
 0x208   : > { %p24_p6 = scmp.ge.s32.totalorder %s27_s20, 4   ;;  %s1218_s16 = smov %s883_s17 }
 0x209   : > { %s1219_s17 = smov %s983_s29  ;;  %s1220_s18 = smov %s891_s19 }
 0x20a   : > { %s1221_s19 = smov %s1223_s23  ;;  %26 = sbr.rel (!%p24_p6) target bundleno = 10 (0xa), region = 118 }
 0x211   :  { %479 = vsyncpa [#allocation5], 1 }
 0x212   :  { %481 = vsyncpa [#allocation5 + $0x1], 1 }
 0x213   :  { %482 = vsyncpa [#allocation8], 1 }
 0x214   :  { %484 = vsyncpa [#allocation8 + $0x1], 1 }
 0x215   :  { %485 = vsyncpa [#allocation6], 1 }
 0x216   :  { %487 = vsyncpa [#allocation6 + $0x1], 1 }
 0x217   :  { %488 = vsyncpa [#allocation11], 1 }
 0x218   :  { %490 = vsyncpa [#allocation11 + $0x1], 1 }

</bundles_post_ra>
